<compile_context>
chip_gen: v7x
topology: tpu7x:2x2x1
jax: 0.10.0
libtpu: 0.0.40
codegen_flags: <defaults>
</compile_context>

<pallas_src>
import functools
import math

import jax
import jax.numpy as jnp
from jax.experimental import pallas as pl
from jax.experimental.pallas import tpu as pltpu

BN_EPS = 1e-5


# ----------------------------- Pallas kernels ------------------------------ #
def _matmul_partial_kernel(x_ref, w_ref, y_ref, p_ref, acc_ref):
    """Tiled matmul (bf16 in, f32 acc) + per-channel partial BN sums.

    x: [tm, tk] bf16, w: [tk, tn] bf16 -> y: [tm, tn] f32,
    p: [8, tn] f32 with row0 = sum_m(y), row1 = sum_m(y*y) for this M tile.
    """
    k = pl.program_id(2)

    @pl.when(k == 0)
    def _():
        acc_ref[...] = jnp.zeros_like(acc_ref)

    acc_ref[...] += jnp.dot(x_ref[...], w_ref[...],
                            preferred_element_type=jnp.float32)

    @pl.when(k == pl.num_programs(2) - 1)
    def _():
        acc = acc_ref[...]
        y_ref[...] = acc
        s = jnp.sum(acc, axis=0, keepdims=True)
        sq = jnp.sum(acc * acc, axis=0, keepdims=True)
        pad = jnp.zeros((6, acc.shape[1]), jnp.float32)
        p_ref[...] = jnp.concatenate([s, sq, pad], axis=0)


def _bn_act_kernel(y_ref, s_ref, b_ref, o_ref, *, relu):
    """Epilogue: y*scale + shift (one FMA), optional ReLU, cast to bf16."""
    y = y_ref[...] * s_ref[...] + b_ref[...]
    if relu:
        y = jnp.maximum(y, 0.0)
    o_ref[...] = y.astype(o_ref.dtype)


def _bn_add_relu_kernel(y_ref, s_ref, b_ref, r_ref, o_ref):
    """Epilogue with fused residual add + ReLU (Bottleneck conv3)."""
    y = y_ref[...] * s_ref[...] + b_ref[...] + r_ref[...].astype(jnp.float32)
    o_ref[...] = jnp.maximum(y, 0.0).astype(o_ref.dtype)


# ------------------------------ tiling glue --------------------------------- #
def _round_up(x, m):
    return (x + m - 1) // m * m


def _choose_tiles(M, N, K):
    if M >= 512:
        tm = 512
    elif M >= 256:
        tm = 256
    else:
        tm = _round_up(M, 16)          # single full-extent M block
    Mp = _round_up(M, tm)

    Nb = _round_up(N, 128)             # lane-dense outputs (Cout=64 -> 128)
    tn = 256 if (Nb >= 256 and Nb % 256 == 0) else 128
    Np = _round_up(Nb, tn)

    Kb = _round_up(K, 128)
    if Kb % 512 == 0:
        tk = 512
    elif Kb % 256 == 0:
        tk = 256
    else:
        tk = 128
    Kp = Kb
    return tm, tn, tk, Mp, Np, Kp


def _fused_conv_bn(x2d, w2d, gamma, beta, *, relu, residual=None):
    """x2d: [M, K] bf16, w2d: [K, N] bf16 -> [M, N] bf16 activations."""
    M, K = x2d.shape
    N = w2d.shape[1]
    tm, tn, tk, Mp, Np, Kp = _choose_tiles(M, N, K)
    gm, gn, gk = Mp // tm, Np // tn, Kp // tk

    x_p = x2d if (Mp == M and Kp == K) else jnp.pad(
        x2d, ((0, Mp - M), (0, Kp - K)))
    w_p = w2d if (Kp == K and Np == N) else jnp.pad(
        w2d, ((0, Kp - K), (0, Np - N)))

    # ---- pass 1: tiled matmul + per-tile BN partial sums ----
    y, partials = pl.pallas_call(
        _matmul_partial_kernel,
        out_shape=(jax.ShapeDtypeStruct((Mp, Np), jnp.float32),
                   jax.ShapeDtypeStruct((gm * 8, Np), jnp.float32)),
        grid_spec=pltpu.PrefetchScalarGridSpec(
            num_scalar_prefetch=0,
            grid=(gm, gn, gk),
            in_specs=[pl.BlockSpec((tm, tk), lambda i, j, k: (i, k)),
                      pl.BlockSpec((tk, tn), lambda i, j, k: (k, j))],
            out_specs=(pl.BlockSpec((tm, tn), lambda i, j, k: (i, j)),
                       pl.BlockSpec((8, tn), lambda i, j, k: (i, j))),
            scratch_shapes=[pltpu.VMEM((tm, tn), jnp.float32)]),
        compiler_params=pltpu.CompilerParams(
            dimension_semantics=("parallel", "parallel", "arbitrary")),
    )(x_p, w_p)

    # ---- BN statistics over the full (true) M, in f32 (tiny XLA reduce) ----
    p = partials.reshape(gm, 8, Np)
    s_sum = jnp.sum(p[:, 0, :], axis=0)
    s_sq = jnp.sum(p[:, 1, :], axis=0)
    inv_m = 1.0 / float(M)
    mean = s_sum * inv_m
    var = jnp.maximum(s_sq * inv_m - mean * mean, 0.0)
    g = gamma if Np == N else jnp.pad(gamma, (0, Np - N))
    b = beta if Np == N else jnp.pad(beta, (0, Np - N))
    scale = (g * jax.lax.rsqrt(var + BN_EPS)).reshape(1, Np)
    shift = (b - mean.reshape(-1) * scale.reshape(-1)).reshape(1, Np)

    # ---- pass 2: tiled normalize (+ residual) (+ ReLU) epilogue ----
    out_shape = jax.ShapeDtypeStruct((Mp, Np), jnp.bfloat16)
    eparams = pltpu.CompilerParams(dimension_semantics=("parallel", "parallel"))
    if residual is None:
        out = pl.pallas_call(
            functools.partial(_bn_act_kernel, relu=relu),
            out_shape=out_shape,
            grid_spec=pltpu.PrefetchScalarGridSpec(
                num_scalar_prefetch=0,
                grid=(gm, gn),
                in_specs=[pl.BlockSpec((tm, tn), lambda i, j: (i, j)),
                          pl.BlockSpec((1, tn), lambda i, j: (0, j)),
                          pl.BlockSpec((1, tn), lambda i, j: (0, j))],
                out_specs=pl.BlockSpec((tm, tn), lambda i, j: (i, j))),
            compiler_params=eparams,
        )(y, scale, shift)
    else:
        r_p = residual.astype(jnp.bfloat16)
        if Mp != M or Np != N:
            r_p = jnp.pad(r_p, ((0, Mp - M), (0, Np - N)))
        out = pl.pallas_call(
            _bn_add_relu_kernel,
            out_shape=out_shape,
            grid_spec=pltpu.PrefetchScalarGridSpec(
                num_scalar_prefetch=0,
                grid=(gm, gn),
                in_specs=[pl.BlockSpec((tm, tn), lambda i, j: (i, j)),
                          pl.BlockSpec((1, tn), lambda i, j: (0, j)),
                          pl.BlockSpec((1, tn), lambda i, j: (0, j)),
                          pl.BlockSpec((tm, tn), lambda i, j: (i, j))],
                out_specs=pl.BlockSpec((tm, tn), lambda i, j: (i, j))),
            compiler_params=eparams,
        )(y, scale, shift, r_p)

    return out[:M, :N]


# ------------------------------ conv wrappers ------------------------------- #
def _im2col(x, kh, kw, stride, pad):
    """x: [N, H, W, C] NHWC (bf16) -> ([N*Ho*Wo, kh*kw*C], (N, Ho, Wo))."""
    n, h, w, c = x.shape
    xp = jnp.pad(x, ((0, 0), (pad, pad), (pad, pad), (0, 0)))
    ho = (h + 2 * pad - kh) // stride + 1
    wo = (w + 2 * pad - kw) // stride + 1
    cols = []
    for i in range(kh):
        for j in range(kw):
            cols.append(xp[:, i:i + stride * ho:stride,
                           j:j + stride * wo:stride, :])
    patches = jnp.stack(cols, axis=3)                 # [n, ho, wo, kh*kw, c]
    return patches.reshape(n * ho * wo, kh * kw * c), (n, ho, wo)


def conv_bn(x, conv, *, stride, pad, relu, residual=None):
    """x: NHWC bf16 activation. conv: prepared dict (pre-transposed bf16 w)."""
    kh, kw, cout = conv['kh'], conv['kw'], conv['cout']
    if kh == 1 and kw == 1 and pad == 0:
        # 1x1 conv: no im2col; strided slice handles the downsample case.
        if stride != 1:
            x = x[:, ::stride, ::stride, :]
        n, ho, wo, cin = x.shape
        x2d = x.reshape(n * ho * wo, cin)
    else:
        x2d, (n, ho, wo) = _im2col(x, kh, kw, stride, pad)
    r2d = None if residual is None else residual.reshape(n * ho * wo, cout)
    y2d = _fused_conv_bn(x2d, conv['w2d'], conv['gamma'], conv['beta'],
                         relu=relu, residual=r2d)
    return y2d.reshape(n, ho, wo, cout)


def maxpool_3x3_s2_p1(x):
    """MaxPool2d(3, stride=2, padding=1) on NHWC, fused maximum tree (XLA)."""
    n, h, w, c = x.shape
    xp = jnp.pad(x, ((0, 0), (1, 1), (1, 1), (0, 0)),
                 constant_values=-jnp.inf)
    ho = (h + 2 - 3) // 2 + 1
    wo = (w + 2 - 3) // 2 + 1
    out = None
    for i in range(3):
        for j in range(3):
            v = xp[:, i:i + 2 * ho:2, j:j + 2 * wo:2, :]
            out = v if out is None else jnp.maximum(out, v)
    return out


# ---------------------------- parameter setup ------------------------------ #
def _conv_init(key, cout, cin, kh, kw):
    # matches: m.weight.data.normal_(0, sqrt(2.0 / (kh*kw*cout)))
    std = math.sqrt(2.0 / (kh * kw * cout))
    return jax.random.normal(key, (cout, cin, kh, kw), jnp.float32) * std


def _bn_init(c):
    # matches: weight.fill_(1), bias.zero_()
    return jnp.ones((c,), jnp.float32), jnp.zeros((c,), jnp.float32)


def make_params(key, layers=(3, 4, 6, 3)):
    """ResNet-50 (Bottleneck, expansion=4) backbone params in PyTorch layout."""
    keys = iter(jax.random.split(key, 256))
    params = {'conv1': _conv_init(next(keys), 64, 3, 7, 7), 'bn1': _bn_init(64)}
    inplanes = 64
    cfg = [(64, layers[0], 1), (128, layers[1], 2),
           (256, layers[2], 2), (512, layers[3], 2)]
    for li, (planes, blocks, stride) in enumerate(cfg, start=1):
        layer = []
        for bi in range(blocks):
            s = stride if bi == 0 else 1
            bp = {
                'conv1': _conv_init(next(keys), planes, inplanes, 1, 1),
                'bn1': _bn_init(planes),
                'conv2': _conv_init(next(keys), planes, planes, 3, 3),
                'bn2': _bn_init(planes),
                'conv3': _conv_init(next(keys), planes * 4, planes, 1, 1),
                'bn3': _bn_init(planes * 4),
                'stride': s,
            }
            if bi == 0 and (s != 1 or inplanes != planes * 4):
                bp['down_conv'] = _conv_init(next(keys), planes * 4, inplanes, 1, 1)
                bp['down_bn'] = _bn_init(planes * 4)
            layer.append(bp)
            inplanes = planes * 4
        params[f'layer{li}'] = layer
    return params


def _prep_conv(w, bn):
    """[Cout,Cin,kh,kw] -> matmul-ready [kh*kw*Cin, Cout] bf16 + f32 BN."""
    cout, cin, kh, kw = w.shape
    w2d = jnp.transpose(w, (2, 3, 1, 0)).reshape(kh * kw * cin, cout)
    return {'w2d': w2d.astype(jnp.bfloat16), 'kh': kh, 'kw': kw, 'cout': cout,
            'gamma': bn[0].astype(jnp.float32),
            'beta': bn[1].astype(jnp.float32)}


def prepare_params(params):
    """One-time transpose/reshape/bf16-cast of all conv weights."""
    prepped = {'conv1': _prep_conv(params['conv1'], params['bn1'])}
    for li in range(1, 5):
        layer = []
        for bp in params[f'layer{li}']:
            e = {'conv1': _prep_conv(bp['conv1'], bp['bn1']),
                 'conv2': _prep_conv(bp['conv2'], bp['bn2']),
                 'conv3': _prep_conv(bp['conv3'], bp['bn3']),
                 'stride': bp['stride']}
            if 'down_conv' in bp:
                e['down'] = _prep_conv(bp['down_conv'], bp['down_bn'])
            layer.append(e)
        prepped[f'layer{li}'] = layer
    return prepped


# ------------------------------- forward ----------------------------------- #
def bottleneck(x, bp):
    s = bp['stride']
    out = conv_bn(x, bp['conv1'], stride=1, pad=0, relu=True)
    out = conv_bn(out, bp['conv2'], stride=s, pad=1, relu=True)
    if 'down' in bp:
        identity = conv_bn(x, bp['down'], stride=s, pad=0, relu=False)
    else:
        identity = x
    # conv3 + bn3 + residual add + relu fused in the tiled epilogue kernel
    return conv_bn(out, bp['conv3'], stride=1, pad=0, relu=True,
                   residual=identity)


def cnn_forward(prepped, x_nchw):
    x = jnp.transpose(x_nchw, (0, 2, 3, 1)).astype(jnp.bfloat16)  # NCHW->NHWC
    x = conv_bn(x, prepped['conv1'], stride=2, pad=3, relu=True)
    x = maxpool_3x3_s2_p1(x)
    for li in range(1, 5):
        for bp in prepped[f'layer{li}']:
            x = bottleneck(x, bp)
    return jnp.transpose(x, (0, 3, 1, 2)).astype(jnp.float32)     # NHWC->NCHW


# --------------------------------- main ------------------------------------ #
if __name__ == "__main__":
    root = jax.random.PRNGKey(0)
    pkey, xkey = jax.random.split(root)
    params = make_params(pkey)                  # ResNet-50: layers = [3, 4, 6, 3]
    prepped = prepare_params(params)            # one-time weight layout/bf16 prep
    x = jax.random.normal(xkey, (2, 3, 32, 32), jnp.float32)   # NCHW like PyTorch
    out = cnn_forward(prepped, x)
    out = jax.block_until_ready(out)
    assert out.shape == (2, 2048, 1, 1), out.shape
    assert bool(jnp.all(jnp.isfinite(out)))
    print("KERNEL_OK")
</pallas_src>

<mosaic_0001>
module attributes {stable_mosaic.version = 11 : i64} {
  func.func @_matmul_partial_kernel(%arg0: i32, %arg1: i32, %arg2: i32, %arg3: memref<512x256xbf16, #tpu.memory_space<vmem>>, %arg4: memref<256x128xbf16, #tpu.memory_space<vmem>>, %arg5: memref<512x128xf32, #tpu.memory_space<vmem>>, %arg6: memref<8x128xf32, #tpu.memory_space<vmem>>, %arg7: memref<512x128xf32, #tpu.memory_space<vmem>>) attributes {dimension_semantics = [#tpu.dimension_semantics<parallel>, #tpu.dimension_semantics<parallel>, #tpu.dimension_semantics<arbitrary>], iteration_bounds = array<i64: 1, 1, 1>, scalar_prefetch = 0 : i64, scratch_operands = 1 : i64, tpu.core_type = #tpu.core_type<tc>, window_params = [{transform_indices = @transform_0, window_bounds = array<i64: 512, 256>}, {transform_indices = @transform_1, window_bounds = array<i64: 256, 128>}, {transform_indices = @transform_2, window_bounds = array<i64: 512, 128>}, {transform_indices = @transform_3, window_bounds = array<i64: 8, 128>}]} {
    %c0_i32 = arith.constant 0 : i32
    %0 = arith.cmpi eq, %arg2, %c0_i32 : i32
    %1 = arith.extui %0 : i1 to i32
    %c0_i32_0 = arith.constant 0 : i32
    %2 = arith.cmpi ne, %1, %c0_i32_0 : i32
    scf.if %2 {
      %cst_10 = arith.constant 0.000000e+00 : f32
      %12 = vector.broadcast %cst_10 : f32 to vector<512x128xf32>
      %c0_11 = arith.constant 0 : index
      %c0_12 = arith.constant 0 : index
      %13 = vector.load %arg7[%c0_11, %c0_12] : memref<512x128xf32, #tpu.memory_space<vmem>>, vector<512x128xf32>
      tpu.vector_store %arg7[%c0_11, %c0_12], %12 {strides = array<i32>} : memref<512x128xf32, #tpu.memory_space<vmem>>, vector<512x128xf32>,
    } else {
    }
    %c0 = arith.constant 0 : index
    %c0_1 = arith.constant 0 : index
    %3 = vector.load %arg7[%c0, %c0_1] : memref<512x128xf32, #tpu.memory_space<vmem>>, vector<512x128xf32>
    %c0_2 = arith.constant 0 : index
    %c0_3 = arith.constant 0 : index
    %4 = vector.load %arg3[%c0_2, %c0_3] : memref<512x256xbf16, #tpu.memory_space<vmem>>, vector<512x256xbf16>
    %c0_4 = arith.constant 0 : index
    %c0_5 = arith.constant 0 : index
    %5 = vector.load %arg4[%c0_4, %c0_5] : memref<256x128xbf16, #tpu.memory_space<vmem>>, vector<256x128xbf16>
    %cst = arith.constant dense<0.000000e+00> : vector<512x128xf32>
    %6 = tpu.matmul %4, %5, %cst {dimension_numbers = #tpu.dot_dimension_numbers<[1], [0], [0], [1], [0, 0, 1, 1], [], []>} : vector<512x256xbf16>, vector<256x128xbf16>, vector<512x128xf32> -> vector<512x128xf32>
    %7 = arith.addf %3, %6 : vector<512x128xf32>
    %c0_6 = arith.constant 0 : index
    %c0_7 = arith.constant 0 : index
    %8 = vector.load %arg7[%c0_6, %c0_7] : memref<512x128xf32, #tpu.memory_space<vmem>>, vector<512x128xf32>
    tpu.vector_store %arg7[%c0_6, %c0_7], %7 {strides = array<i32>} : memref<512x128xf32, #tpu.memory_space<vmem>>, vector<512x128xf32>,
    %c0_i32_8 = arith.constant 0 : i32
    %9 = arith.cmpi eq, %arg2, %c0_i32_8 : i32
    %10 = arith.extui %9 : i1 to i32
    %c0_i32_9 = arith.constant 0 : i32
    %11 = arith.cmpi ne, %10, %c0_i32_9 : i32
    scf.if %11 {
      %c0_10 = arith.constant 0 : index
      %c0_11 = arith.constant 0 : index
      %12 = vector.load %arg7[%c0_10, %c0_11] : memref<512x128xf32, #tpu.memory_space<vmem>>, vector<512x128xf32>
      %c0_12 = arith.constant 0 : index
      %c0_13 = arith.constant 0 : index
      %13 = vector.load %arg5[%c0_12, %c0_13] : memref<512x128xf32, #tpu.memory_space<vmem>>, vector<512x128xf32>
      tpu.vector_store %arg5[%c0_12, %c0_13], %12 {strides = array<i32>} : memref<512x128xf32, #tpu.memory_space<vmem>>, vector<512x128xf32>,
      %cst_14 = arith.constant dense<0.000000e+00> : vector<128xf32>
      %14 = vector.multi_reduction <add>, %12, %cst_14 [0] : vector<512x128xf32> to vector<128xf32>
      %15 = vector.shape_cast %14 : vector<128xf32> to vector<1x128xf32>
      %16 = arith.mulf %12, %12 : vector<512x128xf32>
      %cst_15 = arith.constant dense<0.000000e+00> : vector<128xf32>
      %17 = vector.multi_reduction <add>, %16, %cst_15 [0] : vector<512x128xf32> to vector<128xf32>
      %18 = vector.shape_cast %17 : vector<128xf32> to vector<1x128xf32>
      %cst_16 = arith.constant 0.000000e+00 : f32
      %19 = vector.broadcast %cst_16 : f32 to vector<6x128xf32>
      %20 = tpu.concatenate %15, %18, %19 in 0 : vector<1x128xf32>, vector<1x128xf32>, vector<6x128xf32> -> vector<8x128xf32>
      %c0_17 = arith.constant 0 : index
      %c0_18 = arith.constant 0 : index
      %21 = vector.load %arg6[%c0_17, %c0_18] : memref<8x128xf32, #tpu.memory_space<vmem>>, vector<8x128xf32>
      tpu.vector_store %arg6[%c0_17, %c0_18], %20 {strides = array<i32>} : memref<8x128xf32, #tpu.memory_space<vmem>>, vector<8x128xf32>,
    } else {
    }
    return
  }
  func.func @transform_0(%arg0: i32, %arg1: i32, %arg2: i32) -> (i32, i32) {
    %c0_i32 = arith.constant 0 : i32
    return %arg0, %arg2 : i32, i32
  }
  func.func @transform_1(%arg0: i32, %arg1: i32, %arg2: i32) -> (i32, i32) {
    %c0_i32 = arith.constant 0 : i32
    return %arg2, %arg1 : i32, i32
  }
  func.func @transform_2(%arg0: i32, %arg1: i32, %arg2: i32) -> (i32, i32) {
    %c0_i32 = arith.constant 0 : i32
    return %arg0, %arg1 : i32, i32
  }
  func.func @transform_3(%arg0: i32, %arg1: i32, %arg2: i32) -> (i32, i32) {
    %c0_i32 = arith.constant 0 : i32
    return %arg0, %arg1 : i32, i32
  }
}

</mosaic_0001>

<bundles_post_ra>
// kernel: tpu_custom_call.1
= control target key start
LH: loop header
LB: loop body
LE: loop exit
PB: predicated region body
PF: predicated region fallthrough
CT: control target
= control target key end

     0   :  { %9 = vsyncpa [#allocation4], 0  ;;  %s2111_s0 = inlined_call_operand.hbm [shape: bf16[512,256], index: 0, kind: input, shape index: {}]   ;;  %s2112_s1 = inlined_call_operand.hbm [shape: bf16[256,128], index: 1, kind: input, shape index: {}]   ;;  %s2113_s2 = inlined_call_operand.hbm [shape: f32[512,128], index: 2, kind: output, shape index: {0}]   ;;  %s2114_s3 = inlined_call_operand.hbm [shape: f32[8,128], index: 3, kind: output, shape index: {1}]  }
   0x1   :  { %10 = vsyncpa [#allocation7], 0 }
   0x2   :  { %11 = vsyncpa [#allocation5], 0 }
   0x3   :  { %12 = vsyncpa [#allocation10], 0  ;;  %s1804_s12 = smov [#allocation3]   ;;  %s1708_s16 = scalar_lea.hbm %s2111_s0, 8192 }
   0x4   :  { %s18_s13 = sshll.u32 %s1804_s12, 4  ;;  %p1709_p0 = scmp.ne.s32.totalorder %s2111_s0, %s1708_s16  ;;  %s19_s13 = int_to_ptr.vmem [resolvable:$true] %s18_s13 }
   0x5   :  { %p1712_p1 = scmp.lt.u32.totalorder %s1708_s16, %s2111_s0 }
   0x7   :  { %p1714_p2 = pnand %p1712_p1, %p1709_p0 }
   0x9   :  { %1717 = shalt.err (!%p1714_p2)
}
   0xa   :  { %s1718_s21 = scalar_lea.vmem %s19_s13, 8192  ;;  %p1723_p4 = scmp.lt.s32.totalorder %s19_s13, %s19_s13 }
   0xb   :  { %p1719_p3 = scmp.ne.s32.totalorder %s19_s13, %s1718_s21  ;;  %p1724_p5 = scmp.lt.s32.totalorder %s1718_s21, %s1718_s21 }
   0xd   :  { %p1725_p6 = por %p1724_p5, %p1723_p4 }
   0xf   :  { %p1726_p7 = pnand %p1725_p6, %p1719_p3 }
  0x11   :  { %1729 = shalt.err (!%p1726_p7)
}
  0x12   :  { %s1805_s22 = smov 128   ;;  %s1806_s23 = smov 8  }
  0x13   :  { %24 = dma.hbm_to_vmem [thread:$0]  %s2111_s0, 8192, %s19_s13, [#allocation4], %s1805_s22, %s1805_s22, %s1806_s23  }
  0x14   :  { %s1807_s26 = smov [#allocation6]   ;;  %s1730_s30 = scalar_lea.hbm %s2112_s1, 2048 }
  0x15   :  { %s30_s27 = sshll.u32 %s1807_s26, 4  ;;  %p1731_p8 = scmp.ne.s32.totalorder %s2112_s1, %s1730_s30  ;;  %s31_s27 = int_to_ptr.vmem [resolvable:$true] %s30_s27 }
  0x16   :  { %p1734_p9 = scmp.lt.u32.totalorder %s1730_s30, %s2112_s1 }
  0x18   :  { %p1736_p10 = pnand %p1734_p9, %p1731_p8 }
  0x1a   :  { %1739 = shalt.err (!%p1736_p10)
}
  0x1b   :  { %s1740_s8 = scalar_lea.vmem %s31_s27, 2048  ;;  %p1745_p12 = scmp.lt.s32.totalorder %s31_s27, %s31_s27 }
  0x1c   :  { %p1741_p11 = scmp.ne.s32.totalorder %s31_s27, %s1740_s8  ;;  %p1746_p13 = scmp.lt.s32.totalorder %s1740_s8, %s1740_s8 }
  0x1e   :  { %p1747_p0 = por %p1746_p13, %p1745_p12 }
  0x20   :  { %p1748_p1 = pnand %p1747_p0, %p1741_p11 }
  0x22   :  { %1751 = shalt.err (!%p1748_p1)
}
  0x23   :  { %s1808_s0 = smov 64   ;;  %s1809_s9 = smov 4  }
  0x24   :  { %36 = dma.hbm_to_vmem [thread:$0]  %s2112_s1, 2048, %s31_s27, [#allocation7], %s1808_s0, %s1808_s0, %s1809_s9  }
  0x25   :  { %1796 = dma.done.wait [#allocation4], 8192  }
  0x26   :  { %1797 = vsyncadd [#allocation4], 4294959104 }
  0x27   :  { %1798 = dma.done.wait [#allocation7], 2048  }
  0x28   :  { %1799 = vsyncadd [#allocation7], 4294965248  ;;  %v1810_v0 = vmov 0   ;;  %v1596_v1 = vld [vmem:[#allocation6] sm:$0xff]   ;;  %v1597_v2 = vld [vmem:[#allocation6 + $0x8] sm:$0xff]   ;;  %s1811_s1 = smov [#allocation8]  }
  0x29   :  { %688 = vmatprep.subr.bf16.mxu0 %v1810_v0  ;;  %1555 = vmatprep.subr.bf16.mxu1 %v1810_v0  ;;  %v1598_v3 = vld [vmem:[#allocation6 + $0x10] sm:$0xff]   ;;  %v1599_v4 = vld [vmem:[#allocation6 + $0x18] sm:$0xff]   ;;  %v1600_v5 = vld [vmem:[#allocation6 + $0x20] sm:$0xff]   ;;  %s1448_s12 = sshll.u32 %s1811_s1, 4  ;;  %s1449_s12 = int_to_ptr.vmem [resolvable:$true] %s1448_s12 }
  0x2a   :  { %689 = vmatpush1.bf16.msra.mxu0 %v1596_v1  ;;  %1571 = vmatpush1.bf16.msra.mxu1 %v1596_v1  ;;  %v1614_v6 = vld [vmem:[#allocation3 + $0x4] ss:$8 sps:$4 sm:$0xff]   ;;  %v1602_v8 = vld [vmem:[#allocation6 + $0x30] sm:$0xff]   ;;  %v1603_v9 = vld [vmem:[#allocation6 + $0x38] sm:$0xff]   ;;  %s1752_s13 = scalar_lea.vmem %s1449_s12, 8192  ;;  %p1757_p3 = scmp.lt.s32.totalorder %s1449_s12, %s1449_s12 }
  0x2b   :  { %690 = vmatprep.subr.bf16.mxu0 %v1810_v0  ;;  %1556 = vmatprep.subr.bf16.mxu1 %v1810_v0  ;;  %v1601_v7 = vld [vmem:[#allocation6 + $0x28] sm:$0xff]   ;;  %v1604_v11 = vld [vmem:[#allocation6 + $0x40] sm:$0xff]   ;;  %v1606_v13 = vld [vmem:[#allocation6 + $0x50] sm:$0xff]   ;;  %p1753_p2 = scmp.ne.s32.totalorder %s1449_s12, %s1752_s13  ;;  %p1758_p4 = scmp.lt.s32.totalorder %s1752_s13, %s1752_s13 }
  0x2c   :  { %720 = vmatprep.mubr.bf16.mxu0 %v1614_v6  ;;  %v1638_v10 = vld [vmem:[#allocation3 + $0x104] ss:$8 sps:$4 sm:$0xff]   ;;  %v1607_v14 = vld [vmem:[#allocation6 + $0x58] sm:$0xff]   ;;  %v1610_v17 = vld [vmem:[#allocation6 + $0x70] sm:$0xff]  }
  0x2d   :  { %848 = vmatprep.mubr.bf16.mxu1 %v1638_v10  ;;  %v1605_v12 = vld [vmem:[#allocation6 + $0x48] sm:$0xff]   ;;  %v1608_v15 = vld [vmem:[#allocation6 + $0x60] sm:$0xff]   ;;  %v1611_v18 = vld [vmem:[#allocation6 + $0x78] sm:$0xff]   ;;  %p1759_p5 = por %p1758_p4, %p1757_p3 }
  0x2e   :  { %691 = vmatpush1.bf16.msra.mxu0 %v1597_v2  ;;  %1572 = vmatpush1.bf16.msra.mxu1 %v1597_v2  ;;  %v1609_v16 = vld [vmem:[#allocation6 + $0x68] sm:$0xff]   ;;  %v1615_v21 = vld [vmem:[#allocation3 + $0x14] ss:$8 sps:$4 sm:$0xff]   ;;  %v1617_v23 = vld [vmem:[#allocation3 + $0x10] ss:$8 sps:$4 sm:$0xff]  }
  0x2f   :  { %692 = vmatprep.subr.bf16.mxu0 %v1810_v0  ;;  %1557 = vmatprep.subr.bf16.mxu1 %v1810_v0  ;;  %v1612_v19 = vld [vmem:[#allocation3] ss:$8 sps:$4 sm:$0xff]   ;;  %v1642_v22 = vld [vmem:[#allocation3 + $0x114] ss:$8 sps:$4 sm:$0xff]   ;;  %v1644_v24 = vld [vmem:[#allocation3 + $0x110] ss:$8 sps:$4 sm:$0xff]   ;;  %p1760_p6 = pnand %p1759_p5, %p1753_p2 }
  0x30   :  { %v1636_v20 = vld [vmem:[#allocation3 + $0x100] ss:$8 sps:$4 sm:$0xff]   ;;  %v1618_v25 = vld [vmem:[#allocation3 + $0x24] ss:$8 sps:$4 sm:$0xff]   ;;  %v1621_v29 = vld [vmem:[#allocation3 + $0x34] ss:$8 sps:$4 sm:$0xff]  }
  0x31   :  { %v1648_v26 = vld [vmem:[#allocation3 + $0x124] ss:$8 sps:$4 sm:$0xff]   ;;  %v1620_v27 = vld [vmem:[#allocation3 + $0x20] ss:$8 sps:$4 sm:$0xff]   ;;  %v1654_v30 = vld [vmem:[#allocation3 + $0x134] ss:$8 sps:$4 sm:$0xff]  }
  0x32   :  { %693 = vmatpush1.bf16.msra.mxu0 %v1598_v3  ;;  %1573 = vmatpush1.bf16.msra.mxu1 %v1598_v3  ;;  %v1650_v28 = vld [vmem:[#allocation3 + $0x120] ss:$8 sps:$4 sm:$0xff]   ;;  %v1623_v31 = vld [vmem:[#allocation3 + $0x30] ss:$8 sps:$4 sm:$0xff]   ;;  %v1624_v33 = vld [vmem:[#allocation3 + $0x44] ss:$8 sps:$4 sm:$0xff]  }
  0x33   :  { %694 = vmatprep.subr.bf16.mxu0 %v1810_v0  ;;  %1558 = vmatprep.subr.bf16.mxu1 %v1810_v0  ;;  %v1656_v32 = vld [vmem:[#allocation3 + $0x130] ss:$8 sps:$4 sm:$0xff]   ;;  %v1660_v34 = vld [vmem:[#allocation3 + $0x144] ss:$8 sps:$4 sm:$0xff]   ;;  %v1626_v35 = vld [vmem:[#allocation3 + $0x40] ss:$8 sps:$4 sm:$0xff]  }
  0x34   :  { %v1662_v36 = vld [vmem:[#allocation3 + $0x140] ss:$8 sps:$4 sm:$0xff]   ;;  %v1627_v37 = vld [vmem:[#allocation3 + $0x54] ss:$8 sps:$4 sm:$0xff]   ;;  %v1629_v39 = vld [vmem:[#allocation3 + $0x50] ss:$8 sps:$4 sm:$0xff]  }
  0x35   :  { %v1666_v38 = vld [vmem:[#allocation3 + $0x154] ss:$8 sps:$4 sm:$0xff]   ;;  %v1668_v40 = vld [vmem:[#allocation3 + $0x150] ss:$8 sps:$4 sm:$0xff]   ;;  %v1630_v41 = vld [vmem:[#allocation3 + $0x64] ss:$8 sps:$4 sm:$0xff]  }
  0x36   :  { %695 = vmatpush1.bf16.msra.mxu0 %v1599_v4  ;;  %1574 = vmatpush1.bf16.msra.mxu1 %v1599_v4  ;;  %v1672_v42 = vld [vmem:[#allocation3 + $0x164] ss:$8 sps:$4 sm:$0xff]   ;;  %v1632_v43 = vld [vmem:[#allocation3 + $0x60] ss:$8 sps:$4 sm:$0xff]   ;;  %v1633_v45 = vld [vmem:[#allocation3 + $0x74] ss:$8 sps:$4 sm:$0xff]  }
  0x37   :  { %696 = vmatprep.subr.bf16.mxu0 %v1810_v0  ;;  %1559 = vmatprep.subr.bf16.mxu1 %v1810_v0  ;;  %v1674_v44 = vld [vmem:[#allocation3 + $0x160] ss:$8 sps:$4 sm:$0xff]   ;;  %v1678_v46 = vld [vmem:[#allocation3 + $0x174] ss:$8 sps:$4 sm:$0xff]   ;;  %v1635_v47 = vld [vmem:[#allocation3 + $0x70] ss:$8 sps:$4 sm:$0xff]  }
  0x38   :  { %v1680_v48 = vld [vmem:[#allocation3 + $0x170] ss:$8 sps:$4 sm:$0xff]   ;;  %v1639_v49 = vld [vmem:[#allocation3 + $0x84] ss:$8 sps:$4 sm:$0xff]   ;;  %v1641_v51 = vld [vmem:[#allocation3 + $0x80] ss:$8 sps:$4 sm:$0xff]  }
  0x39   :  { %v1684_v50 = vld [vmem:[#allocation3 + $0x184] ss:$8 sps:$4 sm:$0xff]   ;;  %v1686_v52 = vld [vmem:[#allocation3 + $0x180] ss:$8 sps:$4 sm:$0xff]   ;;  %v1645_v53 = vld [vmem:[#allocation3 + $0x94] ss:$8 sps:$4 sm:$0xff]  }
  0x3a   :  { %697 = vmatpush1.bf16.msra.mxu0 %v1600_v5  ;;  %1575 = vmatpush1.bf16.msra.mxu1 %v1600_v5  ;;  %v1687_v54 = vld [vmem:[#allocation3 + $0x194] ss:$8 sps:$4 sm:$0xff]   ;;  %v1647_v55 = vld [vmem:[#allocation3 + $0x90] ss:$8 sps:$4 sm:$0xff]   ;;  %v1651_v57 = vld [vmem:[#allocation3 + $0xa4] ss:$8 sps:$4 sm:$0xff]  }
  0x3b   :  { %698 = vmatprep.subr.bf16.mxu0 %v1810_v0  ;;  %1560 = vmatprep.subr.bf16.mxu1 %v1810_v0  ;;  %v1689_v56 = vld [vmem:[#allocation3 + $0x190] ss:$8 sps:$4 sm:$0xff]   ;;  %v1690_v58 = vld [vmem:[#allocation3 + $0x1a4] ss:$8 sps:$4 sm:$0xff]   ;;  %v1653_v59 = vld [vmem:[#allocation3 + $0xa0] ss:$8 sps:$4 sm:$0xff]  }
  0x3c   :  { %v1692_v60 = vld [vmem:[#allocation3 + $0x1a0] ss:$8 sps:$4 sm:$0xff]   ;;  %v1657_v61 = vld [vmem:[#allocation3 + $0xb4] ss:$8 sps:$4 sm:$0xff]   ;;  %v1659_v63 = vld [vmem:[#allocation3 + $0xb0] ss:$8 sps:$4 sm:$0xff]  }
  0x3d   :  { %v1693_v62 = vld [vmem:[#allocation3 + $0x1b4] ss:$8 sps:$4 sm:$0xff]   ;;  %v1663_v1 = vld [vmem:[#allocation3 + $0xc4] ss:$8 sps:$4 sm:$0xff]   ;;  %v1665_v3 = vld [vmem:[#allocation3 + $0xc0] ss:$8 sps:$4 sm:$0xff]  }
  0x3e   :  { %699 = vmatpush1.bf16.msra.mxu0 %v1601_v7  ;;  %1576 = vmatpush1.bf16.msra.mxu1 %v1601_v7  ;;  %v1696_v2 = vld [vmem:[#allocation3 + $0x1c4] ss:$8 sps:$4 sm:$0xff]   ;;  %v1698_v4 = vld [vmem:[#allocation3 + $0x1c0] ss:$8 sps:$4 sm:$0xff]   ;;  %v1669_v5 = vld [vmem:[#allocation3 + $0xd4] ss:$8 sps:$4 sm:$0xff]  }
  0x3f   :  { %700 = vmatprep.subr.bf16.mxu0 %v1810_v0  ;;  %1561 = vmatprep.subr.bf16.mxu1 %v1810_v0  ;;  %v1699_v6 = vld [vmem:[#allocation3 + $0x1d4] ss:$8 sps:$4 sm:$0xff]   ;;  %v1671_v7 = vld [vmem:[#allocation3 + $0xd0] ss:$8 sps:$4 sm:$0xff]   ;;  %v1702_v10 = vld [vmem:[#allocation3 + $0x1e4] ss:$8 sps:$4 sm:$0xff]  }
  0x42   :  { %701 = vmatpush1.bf16.msra.mxu0 %v1602_v8  ;;  %1577 = vmatpush1.bf16.msra.mxu1 %v1602_v8  ;;  %v1701_v8 = vld [vmem:[#allocation3 + $0x1d0] ss:$8 sps:$4 sm:$0xff]  }
  0x43   :  { %702 = vmatprep.subr.bf16.mxu0 %v1810_v0  ;;  %1562 = vmatprep.subr.bf16.mxu1 %v1810_v0 }
  0x46   :  { %703 = vmatpush1.bf16.msra.mxu0 %v1603_v9  ;;  %1578 = vmatpush1.bf16.msra.mxu1 %v1603_v9  ;;  %v1675_v9 = vld [vmem:[#allocation3 + $0xe4] ss:$8 sps:$4 sm:$0xff]  }
  0x47   :  { %704 = vmatprep.subr.bf16.mxu0 %v1810_v0  ;;  %1563 = vmatprep.subr.bf16.mxu1 %v1810_v0 }
  0x4a   :  { %705 = vmatpush1.bf16.msra.mxu0 %v1604_v11  ;;  %1579 = vmatpush1.bf16.msra.mxu1 %v1604_v11  ;;  %v1677_v11 = vld [vmem:[#allocation3 + $0xe0] ss:$8 sps:$4 sm:$0xff]  }
  0x4b   :  { %706 = vmatprep.subr.bf16.mxu0 %v1810_v0  ;;  %1564 = vmatprep.subr.bf16.mxu1 %v1810_v0 }
  0x4e   :  { %707 = vmatpush1.bf16.msra.mxu0 %v1605_v12  ;;  %1580 = vmatpush1.bf16.msra.mxu1 %v1605_v12  ;;  %v1704_v12 = vld [vmem:[#allocation3 + $0x1e0] ss:$8 sps:$4 sm:$0xff]  }
  0x4f   :  { %708 = vmatprep.subr.bf16.mxu0 %v1810_v0  ;;  %1565 = vmatprep.subr.bf16.mxu1 %v1810_v0 }
  0x52   :  { %709 = vmatpush1.bf16.msra.mxu0 %v1606_v13  ;;  %1581 = vmatpush1.bf16.msra.mxu1 %v1606_v13  ;;  %v1681_v13 = vld [vmem:[#allocation3 + $0xf4] ss:$8 sps:$4 sm:$0xff]  }
  0x53   :  { %710 = vmatprep.subr.bf16.mxu0 %v1810_v0  ;;  %1566 = vmatprep.subr.bf16.mxu1 %v1810_v0 }
  0x56   :  { %711 = vmatpush1.bf16.msra.mxu0 %v1607_v14  ;;  %1582 = vmatpush1.bf16.msra.mxu1 %v1607_v14  ;;  %v1705_v14 = vld [vmem:[#allocation3 + $0x1f4] ss:$8 sps:$4 sm:$0xff]  }
  0x57   :  { %712 = vmatprep.subr.bf16.mxu0 %v1810_v0  ;;  %1567 = vmatprep.subr.bf16.mxu1 %v1810_v0 }
  0x5a   :  { %713 = vmatpush1.bf16.msra.mxu0 %v1608_v15  ;;  %1583 = vmatpush1.bf16.msra.mxu1 %v1608_v15  ;;  %v1683_v15 = vld [vmem:[#allocation3 + $0xf0] ss:$8 sps:$4 sm:$0xff]  }
  0x5b   :  { %714 = vmatprep.subr.bf16.mxu0 %v1810_v0  ;;  %1568 = vmatprep.subr.bf16.mxu1 %v1810_v0 }
  0x5e   :  { %715 = vmatpush1.bf16.msra.mxu0 %v1609_v16  ;;  %1584 = vmatpush1.bf16.msra.mxu1 %v1609_v16  ;;  %v1707_v16 = vld [vmem:[#allocation3 + $0x1f0] ss:$8 sps:$4 sm:$0xff]  }
  0x5f   :  { %716 = vmatprep.subr.bf16.mxu0 %v1810_v0  ;;  %1569 = vmatprep.subr.bf16.mxu1 %v1810_v0 }
  0x62   :  { %717 = vmatpush1.bf16.msra.mxu0 %v1610_v17  ;;  %1585 = vmatpush1.bf16.msra.mxu1 %v1610_v17 }
  0x63   :  { %718 = vmatprep.subr.bf16.mxu0 %v1810_v0  ;;  %1570 = vmatprep.subr.bf16.mxu1 %v1810_v0  ;;  %v1695_v0 = vld [vmem:[#allocation3 + $0x1b0] ss:$8 sps:$4 sm:$0xff]  }
  0x66   :  { %719 = vmatpush1.bf16.msra.mxu0 %v1611_v18  ;;  %1586 = vmatpush1.bf16.msra.mxu1 %v1611_v18 }
  0x69   :  { %721 = vmatmul.mubr.bf16.vlgmr.msra.gmra.mrb[0].mxu0 %v1612_v19  ;;  %849 = vmatmul.mubr.bf16.vlgmr.msra.gmra.mrb[0].mxu1 %v1636_v20 }
  0x6a   :  { %728 = vmatprep.mubr.bf16.mxu0 %v1615_v21  ;;  %856 = vmatprep.mubr.bf16.mxu1 %v1642_v22 }
  0x71   :  { %729 = vmatmul.mubr.bf16.gmra.mrb[4].mxu0 %v1617_v23  ;;  %857 = vmatmul.mubr.bf16.gmra.mrb[4].mxu1 %v1644_v24 }
  0x72   :  { %736 = vmatprep.mubr.bf16.mxu0 %v1618_v25  ;;  %864 = vmatprep.mubr.bf16.mxu1 %v1648_v26 }
  0x79   :  { %737 = vmatmul.mubr.bf16.gmra.mrb[8].mxu0 %v1620_v27  ;;  %865 = vmatmul.mubr.bf16.gmra.mrb[8].mxu1 %v1650_v28 }
  0x7a   :  { %744 = vmatprep.mubr.bf16.mxu0 %v1621_v29  ;;  %872 = vmatprep.mubr.bf16.mxu1 %v1654_v30 }
  0x81   :  { %745 = vmatmul.mubr.bf16.gmra.mrb[12].mxu0 %v1623_v31  ;;  %873 = vmatmul.mubr.bf16.gmra.mrb[12].mxu1 %v1656_v32 }
  0x82   :  { %752 = vmatprep.mubr.bf16.mxu0 %v1624_v33  ;;  %880 = vmatprep.mubr.bf16.mxu1 %v1660_v34 }
  0x89   :  { %753 = vmatmul.mubr.bf16.gmra.mrb[16].mxu0 %v1626_v35  ;;  %881 = vmatmul.mubr.bf16.gmra.mrb[16].mxu1 %v1662_v36 }
  0x8a   :  { %760 = vmatprep.mubr.bf16.mxu0 %v1627_v37  ;;  %888 = vmatprep.mubr.bf16.mxu1 %v1666_v38 }
  0x91   :  { %761 = vmatmul.mubr.bf16.gmra.mrb[20].mxu0 %v1629_v39  ;;  %889 = vmatmul.mubr.bf16.gmra.mrb[20].mxu1 %v1668_v40 }
  0x92   :  { %768 = vmatprep.mubr.bf16.mxu0 %v1630_v41  ;;  %896 = vmatprep.mubr.bf16.mxu1 %v1672_v42 }
  0x99   :  { %769 = vmatmul.mubr.bf16.gmra.mrb[24].mxu0 %v1632_v43  ;;  %897 = vmatmul.mubr.bf16.gmra.mrb[24].mxu1 %v1674_v44 }
  0x9a   :  { %776 = vmatprep.mubr.bf16.mxu0 %v1633_v45  ;;  %904 = vmatprep.mubr.bf16.mxu1 %v1678_v46 }
  0xa1   :  { %777 = vmatmul.mubr.bf16.gmra.mrb[28].mxu0 %v1635_v47  ;;  %905 = vmatmul.mubr.bf16.gmra.mrb[28].mxu1 %v1680_v48 }
  0xa2   :  { %784 = vmatprep.mubr.bf16.mxu0 %v1639_v49  ;;  %912 = vmatprep.mubr.bf16.mxu1 %v1684_v50 }
  0xa9   :  { %785 = vmatmul.mubr.bf16.gmra.mrb[32].mxu0 %v1641_v51  ;;  %913 = vmatmul.mubr.bf16.gmra.mrb[32].mxu1 %v1686_v52 }
  0xaa   :  { %792 = vmatprep.mubr.bf16.mxu0 %v1645_v53  ;;  %920 = vmatprep.mubr.bf16.mxu1 %v1687_v54 }
  0xb1   :  { %793 = vmatmul.mubr.bf16.gmra.mrb[36].mxu0 %v1647_v55  ;;  %921 = vmatmul.mubr.bf16.gmra.mrb[36].mxu1 %v1689_v56 }
  0xb2   :  { %800 = vmatprep.mubr.bf16.mxu0 %v1651_v57  ;;  %928 = vmatprep.mubr.bf16.mxu1 %v1690_v58 }
  0xb9   :  { %801 = vmatmul.mubr.bf16.gmra.mrb[40].mxu0 %v1653_v59  ;;  %929 = vmatmul.mubr.bf16.gmra.mrb[40].mxu1 %v1692_v60 }
  0xba   :  { %808 = vmatprep.mubr.bf16.mxu0 %v1657_v61  ;;  %936 = vmatprep.mubr.bf16.mxu1 %v1693_v62 }
  0xc1   :  { %809 = vmatmul.mubr.bf16.gmra.mrb[44].mxu0 %v1659_v63  ;;  %937 = vmatmul.mubr.bf16.gmra.mrb[44].mxu1 %v1695_v0 }
  0xc2   :  { %816 = vmatprep.mubr.bf16.mxu0 %v1663_v1  ;;  %944 = vmatprep.mubr.bf16.mxu1 %v1696_v2 }
  0xc9   :  { %817 = vmatmul.mubr.bf16.gmra.mrb[48].mxu0 %v1665_v3  ;;  %945 = vmatmul.mubr.bf16.gmra.mrb[48].mxu1 %v1698_v4 }
  0xca   :  { %824 = vmatprep.mubr.bf16.mxu0 %v1669_v5  ;;  %952 = vmatprep.mubr.bf16.mxu1 %v1699_v6 }
  0xd1   :  { %825 = vmatmul.mubr.bf16.gmra.mrb[52].mxu0 %v1671_v7  ;;  %953 = vmatmul.mubr.bf16.gmra.mrb[52].mxu1 %v1701_v8 }
  0xd2   :  { %832 = vmatprep.mubr.bf16.mxu0 %v1675_v9  ;;  %960 = vmatprep.mubr.bf16.mxu1 %v1702_v10 }
  0xd9   :  { %833 = vmatmul.mubr.bf16.gmra.mrb[56].mxu0 %v1677_v11  ;;  %961 = vmatmul.mubr.bf16.gmra.mrb[56].mxu1 %v1704_v12 }
  0xda   :  { %840 = vmatprep.mubr.bf16.mxu0 %v1681_v13  ;;  %968 = vmatprep.mubr.bf16.mxu1 %v1705_v14 }
  0xe1   :  { %841 = vmatmul.mubr.bf16.gmra.mrb[60].mxu0 %v1683_v15  ;;  %969 = vmatmul.mubr.bf16.gmra.mrb[60].mxu1 %v1707_v16 }
 0x13c   :  { %v722_v17 = vpop.f32.mrb[0].mxu0  ;;  %v1892_v18 = vpop.f32.mrb[0].mxu1 }
 0x13d   :  { %1172 = vst [vmem:[#allocation8] sm:$0xff] %v722_v17  ;;  %v724_v19 = vpop.f32.mrb[1].mxu0  ;;  %1204 = vst [vmem:[#allocation8 + $0x100] sm:$0xff] %v1892_v18  ;;  %v852_v20 = vpop.f32.mrb[1].mxu1  ;;  %v1305_v23 = vmul.f32 %v722_v17, %v722_v17 }
 0x13e   :  { %v725_v21 = vpop.f32.mrb[2].mxu0  ;;  %v1895_v22 = vpop.f32.mrb[2].mxu1 }
 0x13f   :  { %1173 = vst [vmem:[#allocation8 + $0x8] sm:$0xff] %v725_v21  ;;  %v1236_v24 = vadd.f32 %v725_v21, %v722_v17  ;;  %v1306_v25 = vmul.f32 %v725_v21, %v725_v21  ;;  %v727_v26 = vpop.f32.mrb[3].mxu0  ;;  %1205 = vst [vmem:[#allocation8 + $0x108] sm:$0xff] %v1895_v22  ;;  %v855_v27 = vpop.f32.mrb[3].mxu1 }
 0x141   :  { %v1369_v28 = vadd.f32 %v1306_v25, %v1305_v23 }
 0x144   :  { %v730_v29 = vpop.f32.mrb[4].mxu0  ;;  %v1898_v30 = vpop.f32.mrb[4].mxu1 }
 0x145   :  { %1174 = vst [vmem:[#allocation8 + $0x10] sm:$0xff] %v730_v29  ;;  %v1237_v31 = vadd.f32 %v1236_v24, %v730_v29  ;;  %v1307_v32 = vmul.f32 %v730_v29, %v730_v29  ;;  %v732_v33 = vpop.f32.mrb[5].mxu0  ;;  %1206 = vst [vmem:[#allocation8 + $0x110] sm:$0xff] %v1898_v30  ;;  %v860_v34 = vpop.f32.mrb[5].mxu1 }
 0x146   :  { %v733_v35 = vpop.f32.mrb[6].mxu0  ;;  %v1901_v36 = vpop.f32.mrb[6].mxu1 }
 0x147   :  { %v1370_v37 = vadd.f32 %v1369_v28, %v1307_v32  ;;  %1175 = vst [vmem:[#allocation8 + $0x18] sm:$0xff] %v733_v35  ;;  %v1238_v38 = vadd.f32 %v1237_v31, %v733_v35  ;;  %v1308_v39 = vmul.f32 %v733_v35, %v733_v35  ;;  %v735_v40 = vpop.f32.mrb[7].mxu0  ;;  %1207 = vst [vmem:[#allocation8 + $0x118] sm:$0xff] %v1901_v36  ;;  %v863_v41 = vpop.f32.mrb[7].mxu1 }
 0x149   :  { %v1371_v42 = vadd.f32 %v1370_v37, %v1308_v39 }
 0x14c   :  { %v738_v43 = vpop.f32.mrb[8].mxu0  ;;  %v1904_v44 = vpop.f32.mrb[8].mxu1 }
 0x14d   :  { %1176 = vst [vmem:[#allocation8 + $0x20] sm:$0xff] %v738_v43  ;;  %v1239_v45 = vadd.f32 %v1238_v38, %v738_v43  ;;  %v1309_v46 = vmul.f32 %v738_v43, %v738_v43  ;;  %v740_v47 = vpop.f32.mrb[9].mxu0  ;;  %1208 = vst [vmem:[#allocation8 + $0x120] sm:$0xff] %v1904_v44  ;;  %v868_v48 = vpop.f32.mrb[9].mxu1 }
 0x14e   :  { %v741_v49 = vpop.f32.mrb[10].mxu0  ;;  %v1907_v50 = vpop.f32.mrb[10].mxu1 }
 0x14f   :  { %v1372_v51 = vadd.f32 %v1371_v42, %v1309_v46  ;;  %1177 = vst [vmem:[#allocation8 + $0x28] sm:$0xff] %v741_v49  ;;  %v1240_v52 = vadd.f32 %v1239_v45, %v741_v49  ;;  %v1310_v53 = vmul.f32 %v741_v49, %v741_v49  ;;  %v743_v54 = vpop.f32.mrb[11].mxu0  ;;  %1209 = vst [vmem:[#allocation8 + $0x128] sm:$0xff] %v1907_v50  ;;  %v871_v55 = vpop.f32.mrb[11].mxu1 }
 0x151   :  { %v1373_v56 = vadd.f32 %v1372_v51, %v1310_v53 }
 0x154   :  { %v746_v57 = vpop.f32.mrb[12].mxu0  ;;  %v1910_v58 = vpop.f32.mrb[12].mxu1 }
 0x155   :  { %1178 = vst [vmem:[#allocation8 + $0x30] sm:$0xff] %v746_v57  ;;  %v1241_v59 = vadd.f32 %v1240_v52, %v746_v57  ;;  %v1311_v60 = vmul.f32 %v746_v57, %v746_v57  ;;  %v748_v61 = vpop.f32.mrb[13].mxu0  ;;  %1210 = vst [vmem:[#allocation8 + $0x130] sm:$0xff] %v1910_v58  ;;  %v876_v62 = vpop.f32.mrb[13].mxu1 }
 0x156   :  { %v749_v63 = vpop.f32.mrb[14].mxu0  ;;  %v1913_v0 = vpop.f32.mrb[14].mxu1 }
 0x157   :  { %v1374_v1 = vadd.f32 %v1373_v56, %v1311_v60  ;;  %1179 = vst [vmem:[#allocation8 + $0x38] sm:$0xff] %v749_v63  ;;  %v1242_v2 = vadd.f32 %v1241_v59, %v749_v63  ;;  %v1312_v3 = vmul.f32 %v749_v63, %v749_v63  ;;  %v751_v4 = vpop.f32.mrb[15].mxu0  ;;  %1211 = vst [vmem:[#allocation8 + $0x138] sm:$0xff] %v1913_v0  ;;  %v879_v5 = vpop.f32.mrb[15].mxu1 }
 0x159   :  { %v1375_v6 = vadd.f32 %v1374_v1, %v1312_v3 }
 0x15c   :  { %v754_v7 = vpop.f32.mrb[16].mxu0  ;;  %v1916_v8 = vpop.f32.mrb[16].mxu1 }
 0x15d   :  { %1180 = vst [vmem:[#allocation8 + $0x40] sm:$0xff] %v754_v7  ;;  %v1243_v9 = vadd.f32 %v1242_v2, %v754_v7  ;;  %v1313_v10 = vmul.f32 %v754_v7, %v754_v7  ;;  %v756_v11 = vpop.f32.mrb[17].mxu0  ;;  %1212 = vst [vmem:[#allocation8 + $0x140] sm:$0xff] %v1916_v8  ;;  %v884_v12 = vpop.f32.mrb[17].mxu1 }
 0x15e   :  { %v757_v13 = vpop.f32.mrb[18].mxu0  ;;  %v1919_v14 = vpop.f32.mrb[18].mxu1 }
 0x15f   :  { %v1376_v15 = vadd.f32 %v1375_v6, %v1313_v10  ;;  %1181 = vst [vmem:[#allocation8 + $0x48] sm:$0xff] %v757_v13  ;;  %v1244_v16 = vadd.f32 %v1243_v9, %v757_v13  ;;  %v1314_v17 = vmul.f32 %v757_v13, %v757_v13  ;;  %v759_v19 = vpop.f32.mrb[19].mxu0  ;;  %1213 = vst [vmem:[#allocation8 + $0x148] sm:$0xff] %v1919_v14  ;;  %v887_v20 = vpop.f32.mrb[19].mxu1 }
 0x161   :  { %v1377_v21 = vadd.f32 %v1376_v15, %v1314_v17 }
 0x164   :  { %v762_v23 = vpop.f32.mrb[20].mxu0  ;;  %v1922_v24 = vpop.f32.mrb[20].mxu1 }
 0x165   :  { %1182 = vst [vmem:[#allocation8 + $0x50] sm:$0xff] %v762_v23  ;;  %v1245_v25 = vadd.f32 %v1244_v16, %v762_v23  ;;  %v1315_v26 = vmul.f32 %v762_v23, %v762_v23  ;;  %v764_v27 = vpop.f32.mrb[21].mxu0  ;;  %1214 = vst [vmem:[#allocation8 + $0x150] sm:$0xff] %v1922_v24  ;;  %v892_v28 = vpop.f32.mrb[21].mxu1 }
 0x166   :  { %v765_v29 = vpop.f32.mrb[22].mxu0  ;;  %v1925_v31 = vpop.f32.mrb[22].mxu1 }
 0x167   :  { %v1378_v32 = vadd.f32 %v1377_v21, %v1315_v26  ;;  %1183 = vst [vmem:[#allocation8 + $0x58] sm:$0xff] %v765_v29  ;;  %v1246_v33 = vadd.f32 %v1245_v25, %v765_v29  ;;  %v1316_v34 = vmul.f32 %v765_v29, %v765_v29  ;;  %v767_v35 = vpop.f32.mrb[23].mxu0  ;;  %1215 = vst [vmem:[#allocation8 + $0x158] sm:$0xff] %v1925_v31  ;;  %v895_v37 = vpop.f32.mrb[23].mxu1 }
 0x169   :  { %v1379_v38 = vadd.f32 %v1378_v32, %v1316_v34 }
 0x16c   :  { %v770_v39 = vpop.f32.mrb[24].mxu0  ;;  %v1928_v40 = vpop.f32.mrb[24].mxu1 }
 0x16d   :  { %1184 = vst [vmem:[#allocation8 + $0x60] sm:$0xff] %v770_v39  ;;  %v1247_v41 = vadd.f32 %v1246_v33, %v770_v39  ;;  %v1317_v42 = vmul.f32 %v770_v39, %v770_v39  ;;  %v772_v43 = vpop.f32.mrb[25].mxu0  ;;  %1216 = vst [vmem:[#allocation8 + $0x160] sm:$0xff] %v1928_v40  ;;  %v900_v45 = vpop.f32.mrb[25].mxu1 }
 0x16e   :  { %v773_v46 = vpop.f32.mrb[26].mxu0  ;;  %v1931_v47 = vpop.f32.mrb[26].mxu1 }
 0x16f   :  { %v1380_v48 = vadd.f32 %v1379_v38, %v1317_v42  ;;  %1185 = vst [vmem:[#allocation8 + $0x68] sm:$0xff] %v773_v46  ;;  %v1248_v49 = vadd.f32 %v1247_v41, %v773_v46  ;;  %v1318_v51 = vmul.f32 %v773_v46, %v773_v46  ;;  %v775_v52 = vpop.f32.mrb[27].mxu0  ;;  %1217 = vst [vmem:[#allocation8 + $0x168] sm:$0xff] %v1931_v47  ;;  %v903_v53 = vpop.f32.mrb[27].mxu1 }
 0x171   :  { %v1381_v54 = vadd.f32 %v1380_v48, %v1318_v51 }
 0x174   :  { %v778_v55 = vpop.f32.mrb[28].mxu0  ;;  %v1934_v56 = vpop.f32.mrb[28].mxu1 }
 0x175   :  { %1186 = vst [vmem:[#allocation8 + $0x70] sm:$0xff] %v778_v55  ;;  %v1249_v57 = vadd.f32 %v1248_v49, %v778_v55  ;;  %v1319_v59 = vmul.f32 %v778_v55, %v778_v55  ;;  %v780_v60 = vpop.f32.mrb[29].mxu0  ;;  %1218 = vst [vmem:[#allocation8 + $0x170] sm:$0xff] %v1934_v56  ;;  %v908_v61 = vpop.f32.mrb[29].mxu1 }
 0x176   :  { %v781_v62 = vpop.f32.mrb[30].mxu0  ;;  %v1937_v63 = vpop.f32.mrb[30].mxu1 }
 0x177   :  { %v1382_v1 = vadd.f32 %v1381_v54, %v1319_v59  ;;  %1187 = vst [vmem:[#allocation8 + $0x78] sm:$0xff] %v781_v62  ;;  %v1250_v2 = vadd.f32 %v1249_v57, %v781_v62  ;;  %v1320_v3 = vmul.f32 %v781_v62, %v781_v62  ;;  %v783_v4 = vpop.f32.mrb[31].mxu0  ;;  %1219 = vst [vmem:[#allocation8 + $0x178] sm:$0xff] %v1937_v63  ;;  %v911_v5 = vpop.f32.mrb[31].mxu1 }
 0x179   :  { %v1383_v6 = vadd.f32 %v1382_v1, %v1320_v3 }
 0x17c   :  { %v786_v7 = vpop.f32.mrb[32].mxu0  ;;  %v1940_v9 = vpop.f32.mrb[32].mxu1 }
 0x17d   :  { %1188 = vst [vmem:[#allocation8 + $0x80] sm:$0xff] %v786_v7  ;;  %v1251_v10 = vadd.f32 %v1250_v2, %v786_v7  ;;  %v1321_v11 = vmul.f32 %v786_v7, %v786_v7  ;;  %v788_v12 = vpop.f32.mrb[33].mxu0  ;;  %1220 = vst [vmem:[#allocation8 + $0x180] sm:$0xff] %v1940_v9  ;;  %v916_v13 = vpop.f32.mrb[33].mxu1 }
 0x17e   :  { %v789_v15 = vpop.f32.mrb[34].mxu0  ;;  %v1943_v16 = vpop.f32.mrb[34].mxu1 }
 0x17f   :  { %v1384_v17 = vadd.f32 %v1383_v6, %v1321_v11  ;;  %1189 = vst [vmem:[#allocation8 + $0x88] sm:$0xff] %v789_v15  ;;  %v1252_v19 = vadd.f32 %v1251_v10, %v789_v15  ;;  %v1322_v20 = vmul.f32 %v789_v15, %v789_v15  ;;  %v791_v21 = vpop.f32.mrb[35].mxu0  ;;  %1221 = vst [vmem:[#allocation8 + $0x188] sm:$0xff] %v1943_v16  ;;  %v919_v23 = vpop.f32.mrb[35].mxu1 }
 0x181   :  { %v1385_v25 = vadd.f32 %v1384_v17, %v1322_v20 }
 0x184   :  { %v794_v26 = vpop.f32.mrb[36].mxu0  ;;  %v1946_v27 = vpop.f32.mrb[36].mxu1 }
 0x185   :  { %1190 = vst [vmem:[#allocation8 + $0x90] sm:$0xff] %v794_v26  ;;  %v1253_v28 = vadd.f32 %v1252_v19, %v794_v26  ;;  %v1323_v29 = vmul.f32 %v794_v26, %v794_v26  ;;  %v796_v32 = vpop.f32.mrb[37].mxu0  ;;  %1222 = vst [vmem:[#allocation8 + $0x190] sm:$0xff] %v1946_v27  ;;  %v924_v33 = vpop.f32.mrb[37].mxu1 }
 0x186   :  { %v797_v34 = vpop.f32.mrb[38].mxu0  ;;  %v1949_v35 = vpop.f32.mrb[38].mxu1 }
 0x187   :  { %v1386_v37 = vadd.f32 %v1385_v25, %v1323_v29  ;;  %1191 = vst [vmem:[#allocation8 + $0x98] sm:$0xff] %v797_v34  ;;  %v1254_v38 = vadd.f32 %v1253_v28, %v797_v34  ;;  %v1324_v39 = vmul.f32 %v797_v34, %v797_v34  ;;  %v799_v41 = vpop.f32.mrb[39].mxu0  ;;  %1223 = vst [vmem:[#allocation8 + $0x198] sm:$0xff] %v1949_v35  ;;  %v927_v42 = vpop.f32.mrb[39].mxu1 }
 0x189   :  { %v1387_v43 = vadd.f32 %v1386_v37, %v1324_v39 }
 0x18c   :  { %v802_v45 = vpop.f32.mrb[40].mxu0  ;;  %v1952_v46 = vpop.f32.mrb[40].mxu1 }
 0x18d   :  { %1192 = vst [vmem:[#allocation8 + $0xa0] sm:$0xff] %v802_v45  ;;  %v1255_v48 = vadd.f32 %v1254_v38, %v802_v45  ;;  %v1325_v49 = vmul.f32 %v802_v45, %v802_v45  ;;  %v804_v51 = vpop.f32.mrb[41].mxu0  ;;  %1224 = vst [vmem:[#allocation8 + $0x1a0] sm:$0xff] %v1952_v46  ;;  %v932_v52 = vpop.f32.mrb[41].mxu1 }
 0x18e   :  { %v805_v53 = vpop.f32.mrb[42].mxu0  ;;  %v1955_v54 = vpop.f32.mrb[42].mxu1 }
 0x18f   :  { %v1388_v55 = vadd.f32 %v1387_v43, %v1325_v49  ;;  %1193 = vst [vmem:[#allocation8 + $0xa8] sm:$0xff] %v805_v53  ;;  %v1256_v57 = vadd.f32 %v1255_v48, %v805_v53  ;;  %v1326_v59 = vmul.f32 %v805_v53, %v805_v53  ;;  %v807_v60 = vpop.f32.mrb[43].mxu0  ;;  %1225 = vst [vmem:[#allocation8 + $0x1a8] sm:$0xff] %v1955_v54  ;;  %v935_v61 = vpop.f32.mrb[43].mxu1 }
 0x191   :  { %v1389_v62 = vadd.f32 %v1388_v55, %v1326_v59 }
 0x194   :  { %v810_v1 = vpop.f32.mrb[44].mxu0  ;;  %v1958_v2 = vpop.f32.mrb[44].mxu1 }
 0x195   :  { %1194 = vst [vmem:[#allocation8 + $0xb0] sm:$0xff] %v810_v1  ;;  %v1257_v3 = vadd.f32 %v1256_v57, %v810_v1  ;;  %v1327_v4 = vmul.f32 %v810_v1, %v810_v1  ;;  %v812_v5 = vpop.f32.mrb[45].mxu0  ;;  %1226 = vst [vmem:[#allocation8 + $0x1b0] sm:$0xff] %v1958_v2  ;;  %v940_v6 = vpop.f32.mrb[45].mxu1 }
 0x196   :  { %v813_v7 = vpop.f32.mrb[46].mxu0  ;;  %v1961_v10 = vpop.f32.mrb[46].mxu1 }
 0x197   :  { %v1390_v11 = vadd.f32 %v1389_v62, %v1327_v4  ;;  %1195 = vst [vmem:[#allocation8 + $0xb8] sm:$0xff] %v813_v7  ;;  %v1258_v12 = vadd.f32 %v1257_v3, %v813_v7  ;;  %v1328_v13 = vmul.f32 %v813_v7, %v813_v7  ;;  %v815_v15 = vpop.f32.mrb[47].mxu0  ;;  %1227 = vst [vmem:[#allocation8 + $0x1b8] sm:$0xff] %v1961_v10  ;;  %v943_v17 = vpop.f32.mrb[47].mxu1 }
 0x199   :  { %v1391_v19 = vadd.f32 %v1390_v11, %v1328_v13 }
 0x19c   :  { %v818_v20 = vpop.f32.mrb[48].mxu0  ;;  %v1964_v21 = vpop.f32.mrb[48].mxu1 }
 0x19d   :  { %1196 = vst [vmem:[#allocation8 + $0xc0] sm:$0xff] %v818_v20  ;;  %v1259_v23 = vadd.f32 %v1258_v12, %v818_v20  ;;  %v1329_v25 = vmul.f32 %v818_v20, %v818_v20  ;;  %v820_v26 = vpop.f32.mrb[49].mxu0  ;;  %1228 = vst [vmem:[#allocation8 + $0x1c0] sm:$0xff] %v1964_v21  ;;  %v948_v28 = vpop.f32.mrb[49].mxu1 }
 0x19e   :  { %v821_v29 = vpop.f32.mrb[50].mxu0  ;;  %v1967_v32 = vpop.f32.mrb[50].mxu1 }
 0x19f   :  { %v1392_v33 = vadd.f32 %v1391_v19, %v1329_v25  ;;  %1197 = vst [vmem:[#allocation8 + $0xc8] sm:$0xff] %v821_v29  ;;  %v1260_v34 = vadd.f32 %v1259_v23, %v821_v29  ;;  %v1330_v37 = vmul.f32 %v821_v29, %v821_v29  ;;  %v823_v38 = vpop.f32.mrb[51].mxu0  ;;  %1229 = vst [vmem:[#allocation8 + $0x1c8] sm:$0xff] %v1967_v32  ;;  %v951_v39 = vpop.f32.mrb[51].mxu1 }
 0x1a1   :  { %v1393_v41 = vadd.f32 %v1392_v33, %v1330_v37 }
 0x1a4   :  { %v826_v42 = vpop.f32.mrb[52].mxu0  ;;  %v1970_v43 = vpop.f32.mrb[52].mxu1 }
 0x1a5   :  { %1198 = vst [vmem:[#allocation8 + $0xd0] sm:$0xff] %v826_v42  ;;  %v1261_v45 = vadd.f32 %v1260_v34, %v826_v42  ;;  %v1331_v48 = vmul.f32 %v826_v42, %v826_v42  ;;  %v828_v49 = vpop.f32.mrb[53].mxu0  ;;  %1230 = vst [vmem:[#allocation8 + $0x1d0] sm:$0xff] %v1970_v43  ;;  %v956_v51 = vpop.f32.mrb[53].mxu1 }
 0x1a6   :  { %v829_v52 = vpop.f32.mrb[54].mxu0  ;;  %v1973_v53 = vpop.f32.mrb[54].mxu1 }
 0x1a7   :  { %v1394_v55 = vadd.f32 %v1393_v41, %v1331_v48  ;;  %1199 = vst [vmem:[#allocation8 + $0xd8] sm:$0xff] %v829_v52  ;;  %v1262_v57 = vadd.f32 %v1261_v45, %v829_v52  ;;  %v1332_v59 = vmul.f32 %v829_v52, %v829_v52  ;;  %v831_v60 = vpop.f32.mrb[55].mxu0  ;;  %1231 = vst [vmem:[#allocation8 + $0x1d8] sm:$0xff] %v1973_v53  ;;  %v959_v61 = vpop.f32.mrb[55].mxu1 }
 0x1a9   :  { %v1395_v62 = vadd.f32 %v1394_v55, %v1332_v59 }
 0x1ac   :  { %v834_v1 = vpop.f32.mrb[56].mxu0  ;;  %v1976_v3 = vpop.f32.mrb[56].mxu1 }
 0x1ad   :  { %1200 = vst [vmem:[#allocation8 + $0xe0] sm:$0xff] %v834_v1  ;;  %v1263_v4 = vadd.f32 %v1262_v57, %v834_v1  ;;  %v1333_v5 = vmul.f32 %v834_v1, %v834_v1  ;;  %v836_v6 = vpop.f32.mrb[57].mxu0  ;;  %1232 = vst [vmem:[#allocation8 + $0x1e0] sm:$0xff] %v1976_v3  ;;  %v964_v7 = vpop.f32.mrb[57].mxu1 }
 0x1ae   :  { %v837_v11 = vpop.f32.mrb[58].mxu0  ;;  %v1979_v12 = vpop.f32.mrb[58].mxu1 }
 0x1af   :  { %v1396_v13 = vadd.f32 %v1395_v62, %v1333_v5  ;;  %1201 = vst [vmem:[#allocation8 + $0xe8] sm:$0xff] %v837_v11  ;;  %v1264_v15 = vadd.f32 %v1263_v4, %v837_v11  ;;  %v1334_v17 = vmul.f32 %v837_v11, %v837_v11  ;;  %v839_v19 = vpop.f32.mrb[59].mxu0  ;;  %1233 = vst [vmem:[#allocation8 + $0x1e8] sm:$0xff] %v1979_v12  ;;  %v967_v20 = vpop.f32.mrb[59].mxu1 }
 0x1b1   :  { %v1397_v23 = vadd.f32 %v1396_v13, %v1334_v17 }
 0x1b4   :  { %v842_v25 = vpop.f32.mrb[60].mxu0  ;;  %v1982_v26 = vpop.f32.mrb[60].mxu1 }
 0x1b5   :  { %1202 = vst [vmem:[#allocation8 + $0xf0] sm:$0xff] %v842_v25  ;;  %v1265_v28 = vadd.f32 %v1264_v15, %v842_v25  ;;  %v1335_v29 = vmul.f32 %v842_v25, %v842_v25  ;;  %v844_v33 = vpop.f32.mrb[61].mxu0  ;;  %1234 = vst [vmem:[#allocation8 + $0x1f0] sm:$0xff] %v1982_v26  ;;  %v972_v34 = vpop.f32.mrb[61].mxu1 }
 0x1b6   :  { %v845_v37 = vpop.f32.mrb[62].mxu0  ;;  %v1985_v38 = vpop.f32.mrb[62].mxu1 }
 0x1b7   :  { %v1398_v39 = vadd.f32 %v1397_v23, %v1335_v29  ;;  %1203 = vst [vmem:[#allocation8 + $0xf8] sm:$0xff] %v845_v37  ;;  %v1266_v41 = vadd.f32 %v1265_v28, %v845_v37  ;;  %v1336_v42 = vmul.f32 %v845_v37, %v845_v37  ;;  %v847_v45 = vpop.f32.mrb[63].mxu0  ;;  %1235 = vst [vmem:[#allocation8 + $0x1f8] sm:$0xff] %v1985_v38  ;;  %v975_v48 = vpop.f32.mrb[63].mxu1 }
 0x1b8   :  { %1763 = shalt.err (!%p1760_p6)
}
 0x1b9   :  { %s1764_s16 = scalar_lea.hbm %s2113_s2, 8192 }
 0x1ba   :  { %p1765_p7 = scmp.ne.s32.totalorder %s2113_s2, %s1764_s16  ;;  %p1768_p8 = scmp.lt.u32.totalorder %s1764_s16, %s2113_s2 }
 0x1bc   :  { %p1770_p9 = pnand %p1768_p8, %p1765_p7 }
 0x1be   :  { %1773 = shalt.err (!%p1770_p9)
}
 0x1bf   :  { %1454 = dma.vmem_to_hbm [thread:$0]  %s1449_s12, 8192, %s2113_s2, [#allocation5], %s1805_s22, %s1805_s22, %s1806_s23   ;;  %v1337_v49 = vmul.f32 %v1892_v18, %v1892_v18  ;;  %v1267_v51 = vadd.f32 %v1266_v41, %v1892_v18  ;;  %v1399_v52 = vadd.f32 %v1398_v39, %v1336_v42  ;;  %v1338_v55 = vmul.f32 %v1895_v22, %v1895_v22 }
 0x1c0   :  { %v1339_v60 = vmul.f32 %v1898_v30, %v1898_v30  ;;  %v1340_v1 = vmul.f32 %v1901_v36, %v1901_v36  ;;  %v1341_v18 = vmul.f32 %v1904_v44, %v1904_v44  ;;  %vm1438_vm0 = vcmask 1040384   ;;  %s1812_s2 = smov [#allocation9]  }
 0x1c1   :  { %v1268_v57 = vadd.f32 %v1267_v51, %v1895_v22  ;;  %v1400_v59 = vadd.f32 %v1399_v52, %v1337_v49  ;;  %v1342_v22 = vmul.f32 %v1907_v50, %v1907_v50  ;;  %s1461_s22 = sshll.u32 %s1812_s2, 4  ;;  %vm1440_vm1 = vcmask 1041408   ;;  %s1462_s22 = int_to_ptr.vmem [resolvable:$true] %s1461_s22 }
 0x1c2   :  { %s1774_s23 = scalar_lea.vmem %s1462_s22, 128  ;;  %p1779_p11 = scmp.lt.s32.totalorder %s1462_s22, %s1462_s22 }
 0x1c3   :  { %v1269_v61 = vadd.f32 %v1268_v57, %v1898_v30  ;;  %v1401_v62 = vadd.f32 %v1400_v59, %v1338_v55  ;;  %v1343_v30 = vmul.f32 %v1910_v58, %v1910_v58  ;;  %v1353_v57 = vmul.f32 %v1940_v9, %v1940_v9  ;;  %p1775_p10 = scmp.ne.s32.totalorder %s1462_s22, %s1774_s23  ;;  %p1780_p12 = scmp.lt.s32.totalorder %s1774_s23, %s1774_s23 }
 0x1c5   :  { %v1270_v4 = vadd.f32 %v1269_v61, %v1901_v36  ;;  %v1402_v5 = vadd.f32 %v1401_v62, %v1339_v60  ;;  %v1344_v36 = vmul.f32 %v1913_v0, %v1913_v0  ;;  %v1354_v61 = vmul.f32 %v1943_v16, %v1943_v16  ;;  %p1781_p13 = por %p1780_p12, %p1779_p11 }
 0x1c7   :  { %v1271_v6 = vadd.f32 %v1270_v4, %v1904_v44  ;;  %v1403_v7 = vadd.f32 %v1402_v5, %v1340_v1  ;;  %v1345_v44 = vmul.f32 %v1916_v8, %v1916_v8  ;;  %v1355_v1 = vmul.f32 %v1946_v27, %v1946_v27  ;;  %p1782_p0 = pnand %p1781_p13, %p1775_p10 }
 0x1c8   :  { %v1356_v5 = vmul.f32 %v1949_v35, %v1949_v35 }
 0x1c9   :  { %v1272_v11 = vadd.f32 %v1271_v6, %v1907_v50  ;;  %v1404_v13 = vadd.f32 %v1403_v7, %v1341_v18  ;;  %v1346_v50 = vmul.f32 %v1919_v14, %v1919_v14  ;;  %v1357_v6 = vmul.f32 %v1952_v46, %v1952_v46 }
 0x1cb   :  { %v1273_v15 = vadd.f32 %v1272_v11, %v1910_v58  ;;  %v1405_v17 = vadd.f32 %v1404_v13, %v1342_v22  ;;  %v1347_v58 = vmul.f32 %v1922_v24, %v1922_v24  ;;  %v1358_v22 = vmul.f32 %v1955_v54, %v1955_v54 }
 0x1cc   :  { %v1359_v13 = vmul.f32 %v1958_v2, %v1958_v2 }
 0x1cd   :  { %v1274_v19 = vadd.f32 %v1273_v15, %v1913_v0  ;;  %v1406_v20 = vadd.f32 %v1405_v17, %v1343_v30  ;;  %v1348_v0 = vmul.f32 %v1925_v31, %v1925_v31  ;;  %v1360_v15 = vmul.f32 %v1961_v10, %v1961_v10 }
 0x1cf   :  { %v1407_v23 = vadd.f32 %v1406_v20, %v1344_v36  ;;  %v1275_v25 = vadd.f32 %v1274_v19, %v1916_v8  ;;  %v1349_v8 = vmul.f32 %v1928_v40, %v1928_v40  ;;  %v1361_v36 = vmul.f32 %v1964_v21, %v1964_v21 }
 0x1d0   :  { %v1362_v20 = vmul.f32 %v1967_v32, %v1967_v32 }
 0x1d1   :  { %v1276_v28 = vadd.f32 %v1275_v25, %v1919_v14  ;;  %v1408_v29 = vadd.f32 %v1407_v23, %v1345_v44  ;;  %v1350_v14 = vmul.f32 %v1931_v47, %v1931_v47  ;;  %v1363_v23 = vmul.f32 %v1970_v43, %v1970_v43 }
 0x1d3   :  { %v1277_v33 = vadd.f32 %v1276_v28, %v1922_v24  ;;  %v1409_v34 = vadd.f32 %v1408_v29, %v1346_v50  ;;  %v1351_v24 = vmul.f32 %v1934_v56, %v1934_v56  ;;  %v1364_v50 = vmul.f32 %v1973_v53, %v1973_v53 }
 0x1d4   :  { %v1365_v29 = vmul.f32 %v1976_v3, %v1976_v3 }
 0x1d5   :  { %v1278_v37 = vadd.f32 %v1277_v33, %v1925_v31  ;;  %v1410_v39 = vadd.f32 %v1409_v34, %v1347_v58  ;;  %v1352_v31 = vmul.f32 %v1937_v63, %v1937_v63  ;;  %v1366_v33 = vmul.f32 %v1979_v12, %v1979_v12 }
 0x1d7   :  { %v1279_v41 = vadd.f32 %v1278_v37, %v1928_v40  ;;  %v1411_v42 = vadd.f32 %v1410_v39, %v1348_v0  ;;  %v1368_v39 = vmul.f32 %v1985_v38, %v1985_v38 }
 0x1d9   :  { %v1280_v45 = vadd.f32 %v1279_v41, %v1931_v47  ;;  %v1412_v48 = vadd.f32 %v1411_v42, %v1349_v8 }
 0x1db   :  { %v1281_v49 = vadd.f32 %v1280_v45, %v1934_v56  ;;  %v1413_v51 = vadd.f32 %v1412_v48, %v1350_v14 }
 0x1dd   :  { %v1282_v52 = vadd.f32 %v1281_v49, %v1937_v63  ;;  %v1414_v55 = vadd.f32 %v1413_v51, %v1351_v24 }
 0x1df   :  { %v1283_v40 = vadd.f32 %v1282_v52, %v1940_v9  ;;  %v1415_v59 = vadd.f32 %v1414_v55, %v1352_v31 }
 0x1e1   :  { %v1416_v47 = vadd.f32 %v1415_v59, %v1353_v57  ;;  %v1284_v60 = vadd.f32 %v1283_v40, %v1943_v16 }
 0x1e3   :  { %v1417_v56 = vadd.f32 %v1416_v47, %v1354_v61  ;;  %v1285_v62 = vadd.f32 %v1284_v60, %v1946_v27 }
 0x1e5   :  { %v1418_v63 = vadd.f32 %v1417_v56, %v1355_v1  ;;  %v1286_v4 = vadd.f32 %v1285_v62, %v1949_v35 }
 0x1e7   :  { %v1419_v9 = vadd.f32 %v1418_v63, %v1356_v5  ;;  %v1287_v18 = vadd.f32 %v1286_v4, %v1952_v46 }
 0x1e9   :  { %v1420_v7 = vadd.f32 %v1419_v9, %v1357_v6  ;;  %v1288_v16 = vadd.f32 %v1287_v18, %v1955_v54 }
 0x1eb   :  { %v1421_v11 = vadd.f32 %v1420_v7, %v1358_v22  ;;  %v1289_v27 = vadd.f32 %v1288_v16, %v1958_v2 }
 0x1ed   :  { %v1422_v30 = vadd.f32 %v1421_v11, %v1359_v13  ;;  %v1290_v35 = vadd.f32 %v1289_v27, %v1961_v10 }
 0x1ef   :  { %v1423_v17 = vadd.f32 %v1422_v30, %v1360_v15  ;;  %v1291_v46 = vadd.f32 %v1290_v35, %v1964_v21 }
 0x1f1   :  { %v1424_v19 = vadd.f32 %v1423_v17, %v1361_v36  ;;  %v1292_v54 = vadd.f32 %v1291_v46, %v1967_v32 }
 0x1f3   :  { %v1425_v44 = vadd.f32 %v1424_v19, %v1362_v20  ;;  %v1293_v2 = vadd.f32 %v1292_v54, %v1970_v43  ;;  %v1367_v43 = vmul.f32 %v1982_v26, %v1982_v26 }
 0x1f5   :  { %v1426_v25 = vadd.f32 %v1425_v44, %v1363_v23  ;;  %v1294_v10 = vadd.f32 %v1293_v2, %v1973_v53 }
 0x1f7   :  { %v1427_v28 = vadd.f32 %v1426_v25, %v1364_v50  ;;  %v1295_v21 = vadd.f32 %v1294_v10, %v1976_v3 }
 0x1f9   :  { %v1428_v58 = vadd.f32 %v1427_v28, %v1365_v29  ;;  %v1296_v32 = vadd.f32 %v1295_v21, %v1979_v12 }
 0x1fb   :  { %v1429_v34 = vadd.f32 %v1428_v58, %v1366_v33  ;;  %v1297_v0 = vadd.f32 %v1296_v32, %v1982_v26 }
 0x1fd   :  { %v1430_v37 = vadd.f32 %v1429_v34, %v1367_v43  ;;  %v1298_v53 = vadd.f32 %v1297_v0, %v1985_v38 }
 0x1ff   :  { %v1299_v8 = vrot.slane %v1298_v53, 4  ;;  %v1431_v3 = vadd.f32 %v1430_v37, %v1368_v39 }
 0x201   :  { %v1300_v41 = vadd.f32 %v1299_v8, %v1298_v53  ;;  %v1432_v42 = vrot.slane %v1431_v3, 4 }
 0x203   :  { %v1301_v14 = vrot.slane %v1300_v41, 2  ;;  %v1433_v45 = vadd.f32 %v1432_v42, %v1431_v3 }
 0x205   :  { %v1302_v48 = vadd.f32 %v1301_v14, %v1300_v41  ;;  %v1434_v12 = vrot.slane %v1433_v45, 2 }
 0x207   :  { %v1303_v24 = vrot.slane %v1302_v48, 1  ;;  %v1435_v49 = vadd.f32 %v1434_v12, %v1433_v45 }
 0x209   :  { %v1436_v51 = vrot.slane %v1435_v49, 1  ;;  %v1304_v26 = vadd.f32 %v1303_v24, %v1302_v48 }
 0x20b   :  { %v1437_v31 = vadd.f32 %v1436_v51, %v1435_v49 }
 0x20d   :  { %v1439_v52 = vsel %vm1438_vm0, %v1304_v26, %v1437_v31 }
 0x20e   :  { %v1441_v38 = vsel %vm1440_vm1, %v1439_v52, 0.0 }
 0x20f   :  { %1442 = vst [vmem:[#allocation9] sm:$0xff] %v1441_v38 }
 0x210   :  { %1785 = shalt.err (!%p1782_p0)
}
 0x211   :  { %s1786_s27 = scalar_lea.hbm %s2114_s3, 128 }
 0x212   :  { %p1787_p1 = scmp.ne.s32.totalorder %s2114_s3, %s1786_s27  ;;  %p1790_p2 = scmp.lt.u32.totalorder %s1786_s27, %s2114_s3 }
 0x214   :  { %p1792_p3 = pnand %p1790_p2, %p1787_p1 }
 0x216   :  { %1795 = shalt.err (!%p1792_p3)
}
 0x217   :  { %1464 = dma.vmem_to_hbm [thread:$0]  %s1462_s22, 128, %s2114_s3, [#allocation10]  }
 0x218   :  { %1800 = dma.done.wait [#allocation5], 8192  }
 0x219   :  { %1801 = vsyncadd [#allocation5], 4294959104 }
 0x21a   :  { %1802 = dma.done.wait [#allocation10], 128  }
 0x21b   :  { %1803 = vsyncadd [#allocation10], 4294967168 }
 0x21c   :  { %1471 = vsyncpa [#allocation4], 1 }
 0x21d   :  { %1472 = vsyncpa [#allocation7], 1 }
 0x21e   :  { %1473 = vsyncpa [#allocation5], 1 }
 0x21f   :  { %1474 = vsyncpa [#allocation10], 1 }

</bundles_post_ra>
